<compile_context>
chip_gen: v5e
topology: v5e:2x2
jax: 0.10.0
libtpu: 0.0.40
codegen_flags: <defaults>
</compile_context>

<pallas_src>
import jax
import jax.numpy as jnp
from jax.experimental import pallas as pl
from jax.experimental.pallas import tpu as pltpu
from functools import partial

_LANES = 128
_TARGET_BLOCK_BYTES = 2 * 1024 * 1024  # ~2 MiB HBM-dtype bytes per input block


def _mish_kernel(x_ref, o_ref, *, approx_recip: bool):
    x = x_ref[...].astype(jnp.float32)
    # mish(x) = x * tanh(softplus(x)), numerically stable, one exp + one div:
    #   e  = exp(-|x|)
    #   d2 = (1 + e)^2
    #   n2 = e^2  if x >= 0 else 1          (n2/d2 == exp(-2*softplus(x)))
    #   tanh(softplus(x)) = (d2 - n2) / (d2 + n2)
    e = jnp.exp(-jnp.abs(x))
    one_plus_e = 1.0 + e
    d2 = one_plus_e * one_plus_e
    n2 = jnp.where(x >= 0.0, e * e, 1.0)
    num = d2 - n2
    den = d2 + n2
    if approx_recip:
        # EUP reciprocal: frees the VALU slot; accuracy (~1e-4 rel) is far
        # inside bf16/f16 output precision.
        t = num * pl.reciprocal(den, approx=True)
    else:
        t = num / den
    o_ref[...] = (x * t).astype(o_ref.dtype)


def _mish_jnp(x):
    """Plain-jnp mish (reference + <128-element ragged tail path)."""
    xf = x.astype(jnp.float32)
    sp = jnp.maximum(xf, 0.0) + jnp.log1p(jnp.exp(-jnp.abs(xf)))
    return (xf * jnp.tanh(sp)).astype(x.dtype)


@partial(jax.jit, static_argnames=("tile_rows",))
def mish(x: jax.Array, *, tile_rows: int | None = None) -> jax.Array:
    """Elementwise Mish: x * tanh(softplus(x)). Any shape / float dtype."""
    orig_shape = x.shape
    orig_dtype = x.dtype
    n = x.size
    if n == 0:
        return x

    flat = x.reshape(-1)
    n_bulk = (n // _LANES) * _LANES
    n_tail = n - n_bulk

    if n_bulk == 0:
        # Fewer than 128 elements: not worth a kernel launch.
        return _mish_jnp(flat).reshape(orig_shape)

    # Common path (n % 128 == 0): free bitcast reshape, no pad / slice passes.
    bulk = flat if n_tail == 0 else flat[:n_bulk]
    rows = n_bulk // _LANES
    slab = bulk.reshape(rows, _LANES)

    if tile_rows is None:
        # Size the block by bytes: ~2 MiB of HBM-dtype data per block
        # (4096 rows f32, 8192 rows bf16); 16-aligned for bf16 sublane packing.
        tile_rows = _TARGET_BLOCK_BYTES // (_LANES * x.dtype.itemsize)
        tile_rows = max(16, (tile_rows // 16) * 16)
        tile_rows = min(tile_rows, rows)  # == full dim when the array is small
    grid = (pl.cdiv(rows, tile_rows),)

    # Exact divide only where the f32 tolerance demands it.
    approx_recip = jnp.dtype(orig_dtype).itemsize < 4

    # NOTE: input_output_aliases={0: 0} would let the output reuse the slab
    # buffer, but without caller-side donation XLA inserts a defensive copy of
    # x (a full extra HBM pass), so it is intentionally omitted here.
    out_slab = pl.pallas_call(
        partial(_mish_kernel, approx_recip=approx_recip),
        out_shape=jax.ShapeDtypeStruct(slab.shape, orig_dtype),
        grid_spec=pltpu.PrefetchScalarGridSpec(
            num_scalar_prefetch=0,
            grid=grid,
            in_specs=[pl.BlockSpec((tile_rows, _LANES), lambda i: (i, 0))],
            out_specs=pl.BlockSpec((tile_rows, _LANES), lambda i: (i, 0)),
        ),
        compiler_params=pltpu.CompilerParams(
            dimension_semantics=("parallel",),
            vmem_limit_bytes=32 * 1024 * 1024,
        ),
    )(slab)

    if n_tail == 0:
        return out_slab.reshape(orig_shape)

    # Ragged tail (< 128 elements): tiny plain-jnp compute, then stitch.
    tail_out = _mish_jnp(flat[n_bulk:])
    return jnp.concatenate([out_slab.reshape(-1), tail_out]).reshape(orig_shape)


if __name__ == "__main__":
    key = jax.random.PRNGKey(0)

    # NCHW input, small shape consistent with a conv-net activation.
    x = jax.random.normal(key, (2, 4, 16, 16), dtype=jnp.float32) * 3.0
    y = mish(x)
    jax.block_until_ready(y)
    y_ref = _mish_jnp(x)
    assert y.shape == x.shape and y.dtype == x.dtype
    assert jnp.allclose(y, y_ref, atol=1e-5, rtol=1e-5)

    # Ragged size (exercises the bulk + plain-jnp-tail path, no pad pass).
    x2 = jax.random.normal(jax.random.PRNGKey(1), (2, 3, 7, 5), dtype=jnp.float32) * 5.0
    y2 = mish(x2)
    jax.block_until_ready(y2)
    assert jnp.allclose(y2, _mish_jnp(x2), atol=1e-5, rtol=1e-5)

    # bf16 path (HBM-side slab stays bf16; f32 math + EUP approx recip inside).
    xb = (jax.random.normal(jax.random.PRNGKey(2), (2, 4, 16, 16)) * 3.0).astype(jnp.bfloat16)
    yb = mish(xb)
    jax.block_until_ready(yb)
    assert yb.dtype == jnp.bfloat16
    assert jnp.allclose(yb.astype(jnp.float32), _mish_jnp(xb).astype(jnp.float32),
                        atol=2e-2, rtol=2e-2)

    # Force a multi-block grid with a ragged last block (rows=24, tile_rows=16)
    # to exercise Pallas edge masking on the row axis.
    x3 = jax.random.normal(jax.random.PRNGKey(3), (2, 4, 16, 24), dtype=jnp.float32) * 3.0
    y3 = mish(x3, tile_rows=16)
    jax.block_until_ready(y3)
    assert jnp.allclose(y3, _mish_jnp(x3), atol=1e-5, rtol=1e-5)

    print("KERNEL_OK")
</pallas_src>

<mosaic_0001>
module attributes {stable_mosaic.version = 11 : i64} {
  func.func @_mish_kernel(%arg0: i32, %arg1: memref<16x128xf32, #tpu.memory_space<vmem>>, %arg2: memref<16x128xf32, #tpu.memory_space<vmem>>) attributes {dimension_semantics = [#tpu.dimension_semantics<parallel>], iteration_bounds = array<i64: 1>, scalar_prefetch = 0 : i64, scratch_operands = 0 : i64, tpu.core_type = #tpu.core_type<tc>, window_params = [{transform_indices = @transform_0, window_bounds = array<i64: 16, 128>}, {transform_indices = @transform_1, window_bounds = array<i64: 16, 128>}]} {
    %c0 = arith.constant 0 : index
    %c0_0 = arith.constant 0 : index
    %0 = vector.load %arg1[%c0, %c0_0] : memref<16x128xf32, #tpu.memory_space<vmem>>, vector<16x128xf32>
    %1 = math.absf %0 : vector<16x128xf32>
    %cst = arith.constant 0.000000e+00 : f32
    %2 = vector.broadcast %cst : f32 to vector<16x128xf32>
    %3 = arith.subf %2, %1 : vector<16x128xf32>
    %4 = math.exp %3 : vector<16x128xf32>
    %cst_1 = arith.constant 1.000000e+00 : f32
    %5 = vector.broadcast %cst_1 : f32 to vector<16x128xf32>
    %6 = arith.addf %5, %4 : vector<16x128xf32>
    %7 = arith.mulf %6, %6 : vector<16x128xf32>
    %cst_2 = arith.constant 0.000000e+00 : f32
    %8 = vector.broadcast %cst_2 : f32 to vector<16x128xf32>
    %9 = arith.cmpf oge, %0, %8 : vector<16x128xf32>
    %10 = arith.mulf %4, %4 : vector<16x128xf32>
    %cst_3 = arith.constant 1.000000e+00 : f32
    %11 = vector.broadcast %cst_3 : f32 to vector<16x128xf32>
    %12 = arith.select %9, %10, %11 : vector<16x128xi1>, vector<16x128xf32>
    %13 = arith.subf %7, %12 : vector<16x128xf32>
    %14 = arith.addf %7, %12 : vector<16x128xf32>
    %15 = arith.divf %13, %14 : vector<16x128xf32>
    %16 = arith.mulf %0, %15 : vector<16x128xf32>
    %c0_4 = arith.constant 0 : index
    %c0_5 = arith.constant 0 : index
    %17 = vector.load %arg2[%c0_4, %c0_5] : memref<16x128xf32, #tpu.memory_space<vmem>>, vector<16x128xf32>
    tpu.vector_store %arg2[%c0_4, %c0_5], %16 {strides = array<i32>} : memref<16x128xf32, #tpu.memory_space<vmem>>, vector<16x128xf32>,
    return
  }
  func.func @transform_0(%arg0: i32) -> (i32, i32) {
    %c0_i32 = arith.constant 0 : i32
    %c0_i32_0 = arith.constant 0 : i32
    return %arg0, %c0_i32 : i32, i32
  }
  func.func @transform_1(%arg0: i32) -> (i32, i32) {
    %c0_i32 = arith.constant 0 : i32
    %c0_i32_0 = arith.constant 0 : i32
    return %arg0, %c0_i32 : i32, i32
  }
}

</mosaic_0001>

<bundles_post_ra>
// kernel: mish.1
= control target key start
LH: loop header
LB: loop body
LE: loop exit
PB: predicated region body
PF: predicated region fallthrough
CT: control target
= control target key end

     0   :  { %s100_s0 = inlined_call_operand.vmem [shape: f32[16,128], index: 0, kind: input, shape index: {}]   ;;  %s101_s1 = inlined_call_operand.vmem [shape: f32[16,128], index: 1, kind: output, shape index: {}]  }
   0x1   :  { %v8_v0 = vld [vmem:[%s100_s0] sm:$0xff]  ;;  %v9_v1 = vld [vmem:[%s100_s0 + $0x8] sm:$0xff] }
   0x2   :  { %v10_v2 = vand.u32 2147483647, %v8_v0  ;;  %v11_v3 = vand.u32 2147483647, %v9_v1  ;;  %vm22_vm0 = vcmp.ge.f32.partialorder %v8_v0, 0.0  ;;  %vm23_vm1 = vcmp.ge.f32.partialorder %v9_v1, 0.0 }
   0x4   :  { %v12_v4 = vsub.f32 0.0, %v10_v2  ;;  %v13_v5 = vsub.f32 0.0, %v11_v3 }
   0x6   :  { %v14_v6 = vmul.f32 1.442695, %v12_v4  ;;  %v16_v7 = vmul.f32 1.442695, %v13_v5 }
   0x8   :  { %70 = vpow2.f32 %v14_v6 }
   0x9   :  { %72 = vpow2.f32 %v16_v7 }
   0xe   :  { %v71_v8 = vpop.eup %70 }
   0xf   :  { %v73_v9 = vpop.eup %72  ;;  %v18_v10 = vadd.f32 1.0, %v71_v8  ;;  %v24_v11 = vmul.f32 %v71_v8, %v71_v8 }
  0x10   :  { %v19_v12 = vadd.f32 1.0, %v73_v9  ;;  %v25_v13 = vmul.f32 %v73_v9, %v73_v9 }
  0x11   :  { %v20_v14 = vmul.f32 %v18_v10, %v18_v10  ;;  %v26_v15 = vsel %vm22_vm0, %v24_v11, 1.0 }
  0x12   :  { %v21_v16 = vmul.f32 %v19_v12, %v19_v12  ;;  %v27_v17 = vsel %vm23_vm1, %v25_v13, 1.0 }
  0x13   :  { %v30_v18 = vadd.f32 %v26_v15, %v20_v14  ;;  %v28_v33 = vsub.f32 %v20_v14, %v26_v15 }
  0x14   :  { %v31_v19 = vadd.f32 %v27_v17, %v21_v16  ;;  %v29_v36 = vsub.f32 %v21_v16, %v27_v17 }
  0x15   :  { %74 = vrcp.f32 %v30_v18  ;;  %vm37_vm2 = vweird.f32 %v30_v18  ;;  %v43_v23 = vand.u32 2147483648, %v30_v18  ;;  %v41_v26 = vand.u32 2147483647, %v30_v18 }
  0x16   :  { %76 = vrcp.f32 %v31_v19  ;;  %v58_v27 = vand.u32 2147483648, %v31_v19  ;;  %vm52_vm4 = vweird.f32 %v31_v19  ;;  %v56_v29 = vand.u32 2147483647, %v31_v19 }
  0x17   :  { %v44_v31 = vor.u32 1.1754944e-38, %v43_v23  ;;  %vm42_vm7 = vcmp.eq.f32.partialorder %v41_v26, 8.507059e+37 }
  0x18   :  { %v59_v35 = vor.u32 1.1754944e-38, %v58_v27  ;;  %vm57_vm9 = vcmp.eq.f32.partialorder %v56_v29, 8.507059e+37 }
  0x1b   :  { %v75_v20 = vpop.eup %74 }
  0x1c   :  { %v77_v21 = vpop.eup %76  ;;  %v33_v22 = vmul.f32 %v75_v20, %v30_v18  ;;  %vm38_vm3 = vweird.f32 %v75_v20 }
  0x1d   :  { %v48_v24 = vmul.f32 %v77_v21, %v31_v19  ;;  %vm53_vm5 = vweird.f32 %v77_v21  ;;  %vm39_vm6 = vmor %vm37_vm2, %vm38_vm3 }
  0x1e   :  { %v34_v25 = vsub.f32 1.0, %v33_v22  ;;  %vm54_vm8 = vmor %vm52_vm4, %vm53_vm5 }
  0x1f   :  { %v49_v28 = vsub.f32 1.0, %v48_v24 }
  0x20   :  { %v35_v30 = vmul.f32 %v75_v20, %v34_v25 }
  0x21   :  { %v50_v32 = vmul.f32 %v77_v21, %v49_v28 }
  0x22   :  { %v36_v34 = vadd.f32 %v75_v20, %v35_v30 }
  0x23   :  { %v51_v37 = vadd.f32 %v77_v21, %v50_v32 }
  0x24   :  { %v40_v38 = vsel %vm39_vm6, %v75_v20, %v36_v34 }
  0x25   :  { %v45_v39 = vsel %vm42_vm7, %v44_v31, %v40_v38  ;;  %v55_v40 = vsel %vm54_vm8, %v77_v21, %v51_v37 }
  0x26   :  { %v46_v41 = vmul.f32 %v45_v39, %v28_v33  ;;  %v60_v42 = vsel %vm57_vm9, %v59_v35, %v55_v40 }
  0x27   :  { %v61_v43 = vmul.f32 %v60_v42, %v29_v36 }
  0x28   :  { %v62_v44 = vmul.f32 %v46_v41, %v8_v0 }
  0x29   :  { %v63_v45 = vmul.f32 %v61_v43, %v9_v1 }
  0x2a   :  { %64 = vst [vmem:[%s101_s1] sm:$0xff] %v62_v44 }
  0x2b   :  { %65 = vst [vmem:[%s101_s1 + $0x8] sm:$0xff] %v63_v45 }

</bundles_post_ra>
